<compile_context>
chip_gen: v7x
topology: tpu7x:2x2x1
jax: 0.10.0
libtpu: 0.0.40
codegen_flags: <defaults>
</compile_context>

<pallas_src>
import functools

import jax
import jax.numpy as jnp
from jax.experimental import pallas as pl
from jax.experimental.pallas import tpu as pltpu


def _sinusoidal_kernel(x_ref, p_ref, sel_ref, o_ref, *, group, d_emb):
    # x_ref:   (tm, G)  packed positions, G positions per 128-lane output row
    # p_ref:   (1, W)   periods tiled per group: [p0..p_{h-1}, p0..p_{h-1}] * G
    # sel_ref: (1, W)   1 on sin lanes, 0 on cos lanes (per group [1*h | 0*h])
    # o_ref:   (tm, W)  W = G * d_emb ; per-group layout: [sin(pos) | cos(pos)]
    tm, w = o_ref.shape
    x = x_ref[...]                                            # (tm, G)

    if group > 1:
        # Broadcast position g across its d_emb-wide lane group with a short
        # cascade of lane-broadcasts + selects (cheap VPU work, hidden under
        # the EUP sin/cos which dominates this kernel).
        lane = jax.lax.broadcasted_iota(jnp.int32, (tm, w), 1)
        x_b = x[:, 0:1]
        for g in range(1, group):
            x_b = jnp.where(lane >= g * d_emb, x[:, g:g + 1], x_b)
    else:
        x_b = x[:, 0:1]

    # True divide (not x * (1/p)) to stay bit-faithful to the reference at
    # huge phases (min_period=1e-6 -> up to ~1e7 rad).
    pos = x_b / p_ref[...]                                    # (tm, W)
    o_ref[...] = jnp.where(sel_ref[...] == 1, jnp.sin(pos), jnp.cos(pos))


def sinusoidal_embedding(x, d_model, min_period=1e-6, max_period=10.0,
                         block_rows=4096):
    half = d_model // 2
    assert half >= 1, "d_model must be >= 2"
    d_emb = 2 * half                  # embedding width (== d_model when even)
    orig_shape = x.shape

    # Lane-packing factor: G positions share one 128-lane output row.
    if d_emb <= 128 and 128 % d_emb == 0:
        group = 128 // d_emb
    else:
        group = 1                     # fallback: un-packed (still correct)
    w = group * d_emb

    xf = x.reshape(-1).astype(jnp.float32)
    n = xf.shape[0]
    # Pad only to the packing granularity (G positions x 8 sublanes), not to
    # the big tile size; a ragged last tile is handled by the cdiv grid.
    pad = (-n) % (group * 8)
    if pad:
        xf = jnp.pad(xf, (0, pad))
    rows = xf.shape[0] // group
    x2 = xf.reshape(rows, group)

    periods = jnp.linspace(min_period, max_period, half, dtype=jnp.float32)
    periods_full = jnp.tile(periods, 2 * group).reshape(1, w)
    sel = jnp.tile(
        jnp.concatenate([jnp.ones((half,), jnp.int32),
                         jnp.zeros((half,), jnp.int32)]), group).reshape(1, w)

    tm = min(block_rows, rows)        # both are multiples of 8
    grid = (pl.cdiv(rows, tm),)

    kernel = functools.partial(_sinusoidal_kernel, group=group, d_emb=d_emb)

    out = pl.pallas_call(
        kernel,
        out_shape=jax.ShapeDtypeStruct((rows, w), jnp.float32),
        grid_spec=pltpu.PrefetchScalarGridSpec(
            num_scalar_prefetch=0,
            grid=grid,
            in_specs=[
                pl.BlockSpec((tm, group), lambda i: (i, 0)),
                pl.BlockSpec((1, w), lambda i: (0, 0)),   # resident constant
                pl.BlockSpec((1, w), lambda i: (0, 0)),   # resident constant
            ],
            out_specs=pl.BlockSpec((tm, w), lambda i: (i, 0)),
        ),
        compiler_params=pltpu.CompilerParams(
            dimension_semantics=("parallel",)),
    )(x2, periods_full, sel)

    # (rows, G*d_emb) -> (rows*G, d_emb): row-major contiguous, metadata-only.
    out = out.reshape(rows * group, d_emb)[:n]
    return out.reshape(*orig_shape, d_emb)


def sinusoidal_embedding_ref(x, d_model, min_period=1e-6, max_period=10.0):
    half = d_model // 2
    periods = jnp.linspace(min_period, max_period, half, dtype=jnp.float32)
    pos = x.astype(jnp.float32)[..., None] / periods
    return jnp.concatenate([jnp.sin(pos), jnp.cos(pos)], axis=-1)


if __name__ == "__main__":
    d_model = 32   # module hyperparameter (no learnable weights)
    B, S = 2, 8

    key = jax.random.PRNGKey(0)
    x = jax.random.uniform(key, (B, S), dtype=jnp.float32) * 10.0

    out = sinusoidal_embedding(x, d_model)
    out = jax.block_until_ready(out)

    ref = sinusoidal_embedding_ref(x, d_model)
    assert out.shape == (B, S, d_model), out.shape
    assert jnp.allclose(out, ref, atol=1e-5, rtol=1e-5), "mismatch vs reference"

    print("KERNEL_OK")
</pallas_src>

<mosaic_0001>
module attributes {stable_mosaic.version = 11 : i64} {
  func.func @_sinusoidal_kernel(%arg0: i32, %arg1: memref<8x4xf32, #tpu.memory_space<vmem>>, %arg2: memref<1x128xf32, #tpu.memory_space<vmem>>, %arg3: memref<1x128xi32, #tpu.memory_space<vmem>>, %arg4: memref<8x128xf32, #tpu.memory_space<vmem>>) attributes {dimension_semantics = [#tpu.dimension_semantics<parallel>], iteration_bounds = array<i64: 1>, scalar_prefetch = 0 : i64, scratch_operands = 0 : i64, tpu.core_type = #tpu.core_type<tc>, window_params = [{transform_indices = @transform_0, window_bounds = array<i64: 8, 4>}, {pipeline_mode = #tpu.pipeline_mode<synchronous>, transform_indices = @transform_1, window_bounds = array<i64: 1, 128>}, {pipeline_mode = #tpu.pipeline_mode<synchronous>, transform_indices = @transform_2, window_bounds = array<i64: 1, 128>}, {transform_indices = @transform_3, window_bounds = array<i64: 8, 128>}]} {
    %c0 = arith.constant 0 : index
    %c0_0 = arith.constant 0 : index
    %0 = vector.load %arg1[%c0, %c0_0] : memref<8x4xf32, #tpu.memory_space<vmem>>, vector<8x4xf32>
    %1 = tpu.iota {dimensions = array<i32: 1>} : vector<8x128xi32>
    %2 = vector.extract_strided_slice %0 {offsets = [0, 0], sizes = [8, 1], strides = [1, 1]} : vector<8x4xf32> to vector<8x1xf32>
    %c32_i32 = arith.constant 32 : i32
    %3 = vector.broadcast %c32_i32 : i32 to vector<8x128xi32>
    %4 = arith.cmpi sge, %1, %3 : vector<8x128xi32>
    %5 = vector.extract_strided_slice %0 {offsets = [0, 1], sizes = [8, 1], strides = [1, 1]} : vector<8x4xf32> to vector<8x1xf32>
    %6 = vector.shape_cast %5 : vector<8x1xf32> to vector<8x1xf32>
    %7 = vector.broadcast %6 : vector<8x1xf32> to vector<8x128xf32>
    %8 = vector.shape_cast %2 : vector<8x1xf32> to vector<8x1xf32>
    %9 = vector.broadcast %8 : vector<8x1xf32> to vector<8x128xf32>
    %10 = arith.select %4, %7, %9 : vector<8x128xi1>, vector<8x128xf32>
    %c64_i32 = arith.constant 64 : i32
    %11 = vector.broadcast %c64_i32 : i32 to vector<8x128xi32>
    %12 = arith.cmpi sge, %1, %11 : vector<8x128xi32>
    %13 = vector.extract_strided_slice %0 {offsets = [0, 2], sizes = [8, 1], strides = [1, 1]} : vector<8x4xf32> to vector<8x1xf32>
    %14 = vector.shape_cast %13 : vector<8x1xf32> to vector<8x1xf32>
    %15 = vector.broadcast %14 : vector<8x1xf32> to vector<8x128xf32>
    %16 = arith.select %12, %15, %10 : vector<8x128xi1>, vector<8x128xf32>
    %c96_i32 = arith.constant 96 : i32
    %17 = vector.broadcast %c96_i32 : i32 to vector<8x128xi32>
    %18 = arith.cmpi sge, %1, %17 : vector<8x128xi32>
    %19 = vector.extract_strided_slice %0 {offsets = [0, 3], sizes = [8, 1], strides = [1, 1]} : vector<8x4xf32> to vector<8x1xf32>
    %20 = vector.shape_cast %19 : vector<8x1xf32> to vector<8x1xf32>
    %21 = vector.broadcast %20 : vector<8x1xf32> to vector<8x128xf32>
    %22 = arith.select %18, %21, %16 : vector<8x128xi1>, vector<8x128xf32>
    %c0_1 = arith.constant 0 : index
    %c0_2 = arith.constant 0 : index
    %23 = vector.load %arg2[%c0_1, %c0_2] : memref<1x128xf32, #tpu.memory_space<vmem>>, vector<1x128xf32>
    %24 = vector.broadcast %23 : vector<1x128xf32> to vector<8x128xf32>
    %25 = arith.divf %22, %24 : vector<8x128xf32>
    %c0_3 = arith.constant 0 : index
    %c0_4 = arith.constant 0 : index
    %26 = vector.load %arg3[%c0_3, %c0_4] : memref<1x128xi32, #tpu.memory_space<vmem>>, vector<1x128xi32>
    %c1_i32 = arith.constant 1 : i32
    %27 = vector.broadcast %c1_i32 : i32 to vector<1x128xi32>
    %28 = arith.cmpi eq, %26, %27 : vector<1x128xi32>
    %29 = math.sin %25 : vector<8x128xf32>
    %30 = math.cos %25 : vector<8x128xf32>
    %31 = vector.shape_cast %28 : vector<1x128xi1> to vector<1x128xi1>
    %32 = vector.broadcast %31 : vector<1x128xi1> to vector<8x128xi1>
    %33 = arith.select %32, %29, %30 : vector<8x128xi1>, vector<8x128xf32>
    %c0_5 = arith.constant 0 : index
    %c0_6 = arith.constant 0 : index
    %34 = vector.load %arg4[%c0_5, %c0_6] : memref<8x128xf32, #tpu.memory_space<vmem>>, vector<8x128xf32>
    tpu.vector_store %arg4[%c0_5, %c0_6], %33 {strides = array<i32>} : memref<8x128xf32, #tpu.memory_space<vmem>>, vector<8x128xf32>,
    return
  }
  func.func @transform_0(%arg0: i32) -> (i32, i32) {
    %c0_i32 = arith.constant 0 : i32
    %c0_i32_0 = arith.constant 0 : i32
    return %arg0, %c0_i32 : i32, i32
  }
  func.func @transform_1(%arg0: i32) -> (i32, i32) {
    %c0_i32 = arith.constant 0 : i32
    %c0_i32_0 = arith.constant 0 : i32
    %c0_i32_1 = arith.constant 0 : i32
    return %c0_i32, %c0_i32_0 : i32, i32
  }
  func.func @transform_2(%arg0: i32) -> (i32, i32) {
    %c0_i32 = arith.constant 0 : i32
    %c0_i32_0 = arith.constant 0 : i32
    %c0_i32_1 = arith.constant 0 : i32
    return %c0_i32, %c0_i32_0 : i32, i32
  }
  func.func @transform_3(%arg0: i32) -> (i32, i32) {
    %c0_i32 = arith.constant 0 : i32
    %c0_i32_0 = arith.constant 0 : i32
    return %arg0, %c0_i32 : i32, i32
  }
}

</mosaic_0001>

<bundles_post_ra>
// kernel: tpu_custom_call.1
= control target key start
LH: loop header
LB: loop body
LE: loop exit
PB: predicated region body
PF: predicated region fallthrough
CT: control target
= control target key end

     0   :  { %v16_v1 = vlaneseq  ;;  %v340_v3 = vmov 1   ;;  %v341_v4 = vmov 2   ;;  %s418_s0 = inlined_call_operand.vmem [shape: f32[8,4], index: 0, kind: input, shape index: {}]   ;;  %s419_s1 = inlined_call_operand.vmem [shape: f32[1,128], index: 1, kind: input, shape index: {}]   ;;  %s420_s2 = inlined_call_operand.vmem [shape: s32[1,128], index: 2, kind: input, shape index: {}]   ;;  %s421_s3 = inlined_call_operand.hbm [shape: f32[8,128], index: 3, kind: output, shape index: {}]  }
   0x1   :  { %v15_v0 = vld [vmem:[%s418_s0] sm:$0xff]  ;;  %305 = vset.pattern.permute.xlu0 %v340_v3  ;;  %307 = vset.pattern.permute.xlu1 %v341_v4 }
   0x2   :  { %v50_v2 = vld [vmem:[%s420_s2] sm:$0x1] }
   0x3   :  { %vm51_vm0 = vcmp.eq.s32.totalorder %v50_v2, 1 }
   0x4   :  { %8 = vsyncpa [#allocation3], 0  ;;  %21 = vperm.xlu0 %305, %v15_v0   ;;  %31 = vperm.xlu1 %307, %v15_v0   ;;  %v261_v5 = vshrl.u32 %v16_v1, 7  ;;  %v342_v6 = vmov 0   ;;  %v343_v10 = vmov 3   ;;  %v17_v12 = vand.u32 127, %v16_v1 }
   0x5   :  { %v259_v7 = vsel %vm51_vm0, 1, %v342_v6  ;;  %v281_v11 = vld [vmem:[%s419_s1] ss:$0 sm:$0xff]  ;;  %v344_v32 = vmov 683565275   ;;  %s350_s1 = smov [#allocation2]  }
   0x6   :  { %v262_v8 = vsub.s32 0, %v261_v5  ;;  %310 = vrcp.f32 %v281_v11  ;;  %vm18_vm1 = vcmp.ge.s32.totalorder %v17_v12, 32  ;;  %vm29_vm2 = vcmp.ge.s32.totalorder %v17_v12, 64  ;;  %s273_s16 = sshll.u32 %s350_s1, 4  ;;  %s274_s16 = int_to_ptr.vmem [resolvable:$true] %s273_s16 }
   0x7   :  { %vm35_vm3 = vcmp.ge.s32.totalorder %v17_v12, 96  ;;  %v345_v34 = vmov 2475754826   ;;  %v346_v37 = vmov 2131351028   ;;  %s316_s17 = scalar_lea.vmem %s274_s16, 128  ;;  %p321_p1 = scmp.lt.s32.totalorder %s274_s16, %s274_s16 }
   0x8   :  { %v377_v9 = vrot.slane %v259_v7, %v262_v8  ;;  %306 = vset.pattern.permute.xlu0 %v342_v6  ;;  %308 = vset.pattern.permute.xlu1 %v343_v10  ;;  %v347_v40 = vmov 2102212464   ;;  %v348_v43 = vmov 920167782   ;;  %v349_v46 = vmov 1326507024   ;;  %p317_p0 = scmp.ne.s32.totalorder %s274_s16, %s316_s17  ;;  %p322_p2 = scmp.lt.s32.totalorder %s316_s17, %s316_s17 }
   0x9   :  { %25 = vperm.xlu0 %306, %v15_v0   ;;  %37 = vperm.xlu1 %308, %v15_v0  }
   0xa   :  { %vm264_vm15 = vcmp.eq.s32.totalorder %v377_v9, 1  ;;  %p323_p3 = por %p322_p2, %p321_p1 }
   0xc   :  { %p324_p4 = pnand %p323_p3, %p317_p0 }
   0xd   :  { %309 = vset.pattern.permute.xlu0 %v343_v10 }
  0x10   :  { %v311_v17 = vpop.eup %310 }
  0x83   :  { %v22_v13 = vpop.permute.xlu0 %21  ;;  %v32_v14 = vpop.permute.xlu1 %31 }
  0x88   :  { %v26_v15 = vpop.permute.xlu0 %25  ;;  %v38_v16 = vpop.permute.xlu1 %37 }
  0x89   :  { %v28_v18 = vsel %vm18_vm1, %v22_v13, %v26_v15 }
  0x8a   :  { %v34_v19 = vsel %vm29_vm2, %v32_v14, %v28_v18 }
  0x8b   :  { %v40_v20 = vsel %vm35_vm3, %v38_v16, %v34_v19 }
  0x8c   :  { %v382_v21 = vmul.f32 %v311_v17, %v40_v20 }
  0x8e   :  { %v55_v22 = vand.u32 2139095040, %v382_v21  ;;  %v52_v26 = vand.u32 2147483647, %v382_v21  ;;  %vm54_vm11 = vcmp.lt.s32.totalorder %v382_v21, 0 }
  0x90   :  { %v56_v23 = vshrl.u32 %v55_v22, 23  ;;  %v59_v29 = vand.u32 8388607, %v52_v26  ;;  %vm53_vm12 = vcmp.le.f32.partialorder %v52_v26, 0.7853982 }
  0x92   :  { %v282_v24 = vadd.s32 4294967169, %v56_v23  ;;  %v60_v48 = vor.u32 8388608, %v59_v29 }
  0x94   :  { %v62_v25 = vadd.s32 1, %v282_v24  ;;  %v100_v62 = vshll.u32 %v60_v48, 8 }
  0x96   :  { %vm63_vm4 = vcmp.gt.s32.totalorder %v62_v25, 0 }
  0x97   :  { %v64_v27 = vsel %vm63_vm4, %v62_v25, 0  ;;  %vm144_vm4 = vweird.f32 %v382_v21 }
  0x98   :  { %v66_v28 = vand.u32 31, %v64_v27  ;;  %v65_v31 = vshrl.u32 %v64_v27, 5 }
  0x9a   :  { %v67_v30 = vsub.s32 32, %v66_v28  ;;  %v69_v33 = vshll.u32 %v344_v32, %v66_v28  ;;  %v72_v35 = vshll.u32 %v345_v34, %v66_v28  ;;  %v75_v39 = vshll.u32 %v346_v37, %v66_v28 }
  0x9b   :  { %v78_v42 = vshll.u32 %v347_v40, %v66_v28  ;;  %v81_v45 = vshll.u32 %v348_v43, %v66_v28  ;;  %vm84_vm5 = vcmp.lt.s32.totalorder %v65_v31, 1  ;;  %vm87_vm6 = vcmp.lt.s32.totalorder %v65_v31, 4 }
  0x9c   :  { %v70_v36 = vshrl.u32 %v345_v34, %v67_v30  ;;  %v73_v38 = vshrl.u32 %v346_v37, %v67_v30  ;;  %v76_v41 = vshrl.u32 %v347_v40, %v67_v30  ;;  %v79_v44 = vshrl.u32 %v348_v43, %v67_v30 }
  0x9d   :  { %v82_v47 = vshrl.u32 %v349_v46, %v67_v30  ;;  %v68_v57 = vshrl.u32 %v344_v32, %v67_v30  ;;  %vm86_vm7 = vcmp.lt.s32.totalorder %v65_v31, 3  ;;  %vm85_vm8 = vcmp.lt.s32.totalorder %v65_v31, 2 }
  0x9e   :  { %v71_v49 = vor.u32 %v70_v36, %v69_v33  ;;  %v74_v50 = vor.u32 %v73_v38, %v72_v35  ;;  %v77_v51 = vor.u32 %v76_v41, %v75_v39  ;;  %v80_v52 = vor.u32 %v79_v44, %v78_v42 }
  0x9f   :  { %v83_v53 = vor.u32 %v82_v47, %v81_v45 }
  0xa0   :  { %v89_v54 = vsel %vm87_vm6, %v77_v51, 2102212464  ;;  %v92_v55 = vsel %vm84_vm5, %v71_v49, %v74_v50  ;;  %v96_v56 = vsel %vm84_vm5, %v74_v50, %v77_v51  ;;  %v93_v58 = vsel %vm87_vm6, %v80_v52, 920167782 }
  0xa1   :  { %v97_v59 = vsel %vm87_vm6, %v83_v53, 1326507024  ;;  %v94_v60 = vsel %vm86_vm7, %v77_v51, %v93_v58  ;;  %v88_v63 = vsel %vm84_vm5, %v68_v57, %v71_v49  ;;  %v90_v0 = vsel %vm86_vm7, %v74_v50, %v89_v54 }
  0xa2   :  { %v98_v61 = vsel %vm86_vm7, %v80_v52, %v97_v59  ;;  %v95_v1 = vsel %vm85_vm8, %v92_v55, %v94_v60  ;;  %v91_v7 = vsel %vm85_vm8, %v88_v63, %v90_v0 }
  0xa3   :  { %v99_v2 = vsel %vm85_vm8, %v96_v56, %v98_v61  ;;  %v391_v5 = vmul.u32.u64.low %v100_v62, %v95_v1  ;;  %v392_v6 = vmul.u32.u64.high %v100_v62, %v95_v1, %v391_v5  ;;  %v107_v10 = vmul.u32 %v100_v62, %v91_v7 }
  0xa4   :  { %v388_v3 = vmul.u32.u64.low %v100_v62, %v99_v2  ;;  %v389_v4 = vmul.u32.u64.high %v100_v62, %v99_v2, %v388_v3 }
  0xa5   :  { %v110_v8 = vadd.s32 1, %v392_v6 }
  0xa6   :  { %vm109_vm9 = vc.u32 %v389_v4, %v391_v5  ;;  %v108_v23 = vadd.s32 %v391_v5, %v389_v4 }
  0xa7   :  { %v111_v11 = vsel %vm109_vm9, %v110_v8, %v392_v6 }
  0xa8   :  { %v112_v12 = vadd.s32 %v111_v11, %v107_v10 }
  0xaa   :  { %v113_v13 = vadd.s32 536870912, %v112_v12 }
  0xac   :  { %v114_v14 = vshrl.u32 %v113_v13, 30 }
  0xae   :  { %v115_v15 = vshll.u32 %v114_v14, 30  ;;  %v138_v36 = vsub.s32 4, %v114_v14 }
  0xb0   :  { %v116_v16 = vsub.s32 %v112_v12, %v115_v15  ;;  %v139_v39 = vsel %vm54_vm11, %v138_v36, %v114_v14 }
  0xb1   :  { %v141_v41 = vsel %vm53_vm12, 0, %v139_v39 }
  0xb2   :  { %v118_v17 = vsub.s32 0, %v116_v16  ;;  %v145_v42 = vadd.s32 3, %v141_v41  ;;  %v249_v44 = vand.u32 3, %v141_v41 }
  0xb4   :  { %v283_v18 = vmin.u32 %v118_v17, %v116_v16  ;;  %v146_v43 = vand.u32 3, %v145_v42  ;;  %vm254_vm14 = vcmp.eq.s32.totalorder %v249_v44, 2  ;;  %vm251_vm1 = vcmp.eq.s32.totalorder %v249_v44, 0 }
  0xb5   :  { %vm250_vm3 = vcmp.lt.s32.totalorder %v249_v44, 2 }
  0xb6   :  { %v120_v19 = vclz %v283_v18  ;;  %vm151_vm13 = vcmp.eq.s32.totalorder %v146_v43, 2  ;;  %vm148_vm0 = vcmp.eq.s32.totalorder %v146_v43, 0  ;;  %vm147_vm2 = vcmp.lt.s32.totalorder %v146_v43, 2 }
  0xb8   :  { %v284_v20 = vadd.s32 4294967294, %v120_v19 }
  0xba   :  { %vm285_vm10 = vcmp.lt.s32.totalorder %v284_v20, 0 }
  0xbb   :  { %v123_v22 = vsel %vm285_vm10, 0, %v284_v20 }
  0xbc   :  { %v124_v24 = vsub.s32 32, %v123_v22  ;;  %v128_v25 = vsub.s32 4294967266, %v123_v22  ;;  %v125_v27 = vshll.u32 %v116_v16, %v123_v22 }
  0xbe   :  { %v126_v28 = vshrl.u32 %v108_v23, %v124_v24  ;;  %v129_v29 = vadd.s32 127, %v128_v25 }
  0xc0   :  { %v127_v30 = vor.u32 %v126_v28, %v125_v27  ;;  %v130_v31 = vshll.u32 %v129_v29, 23 }
  0xc2   :  { %v131_v32 = vor.u32 4788187, %v130_v31  ;;  %v134_v34 = vcvt.s32.f32 %v127_v30 }
  0xc4   :  { %v132_v33 = vand.u32 2147483647, %v131_v32 }
  0xc6   :  { %v135_v35 = vmul.f32 %v134_v34, %v132_v33 }
  0xc8   :  { %v136_v37 = vxor.u32 2147483648, %v135_v35 }
  0xca   :  { %v137_v38 = vsel %vm54_vm11, %v136_v37, %v135_v35 }
  0xcb   :  { %v140_v40 = vsel %vm53_vm12, %v382_v21, %v137_v38 }
  0xcc   :  { %312 = vcosq.f32 %v140_v40 }
  0xcd   :  { %314 = vsinq.f32 %v140_v40 }
  0xd6   :  { %v313_v45 = vpop.eup %312 }
  0xd7   :  { %v315_v46 = vpop.eup %314  ;;  %v152_v47 = vxor.u32 2147483648, %v313_v45 }
  0xd8   :  { %v149_v48 = vxor.u32 2147483648, %v315_v46 }
  0xd9   :  { %v153_v49 = vsel %vm151_vm13, %v152_v47, %v315_v46  ;;  %v256_v26 = vsel %vm254_vm14, %v152_v47, %v315_v46 }
  0xda   :  { %v150_v50 = vsel %vm148_vm0, %v313_v45, %v149_v48  ;;  %v253_v51 = vsel %vm251_vm1, %v313_v45, %v149_v48 }
  0xdb   :  { %v154_v52 = vsel %vm147_vm2, %v150_v50, %v153_v49  ;;  %v257_v53 = vsel %vm250_vm3, %v253_v51, %v256_v26 }
  0xdc   :  { %v155_v54 = vsel %vm144_vm4, nan, %v154_v52  ;;  %v258_v55 = vsel %vm144_vm4, nan, %v257_v53 }
  0xdd   :  { %v265_v56 = vsel %vm264_vm15, %v155_v54, %v258_v55 }
  0xde   :  { %266 = vst [vmem:[#allocation2] sm:$0xff] %v265_v56 }
  0xdf   :  { %327 = shalt.err (!%p324_p4)
}
  0xe0   :  { %s328_s20 = scalar_lea.hbm %s421_s3, 128 }
  0xe1   :  { %p329_p5 = scmp.ne.s32.totalorder %s421_s3, %s328_s20  ;;  %p332_p6 = scmp.lt.u32.totalorder %s328_s20, %s421_s3 }
  0xe3   :  { %p334_p7 = pnand %p332_p6, %p329_p5 }
  0xe5   :  { %337 = shalt.err (!%p334_p7)
}
  0xe6   :  { %276 = dma.vmem_to_hbm [thread:$0]  %s274_s16, 128, %s421_s3, [#allocation3]  }
  0xe7   :  { %338 = dma.done.wait [#allocation3], 128  }
  0xe8   :  { %339 = vsyncadd [#allocation3], 4294967168 }
  0xe9   :  { %280 = vsyncpa [#allocation3], 1 }

</bundles_post_ra>
